<compile_context>
chip_gen: v6e
topology: v6e:2x2x1
jax: 0.10.0
libtpu: 0.0.40
codegen_flags: <defaults>
</compile_context>

<pallas_src>
import functools

import jax
import jax.numpy as jnp
from jax import lax
from jax.experimental import pallas as pl
from jax.experimental.pallas import tpu as pltpu


def _alphablock_kernel(H, WC, bb,
                       x_ref, m1_ref, s1_ref, b1_ref, m2_ref, s2_ref, b2_ref,
                       out_ref, xpad_scr, pad2_scr):
    """Fused conv3x3 -> BN -> ReLU -> conv3x3 -> BN -> +residual -> ReLU.

    x_ref    : (bb, H, W*C)        f32   input rows (lane-dense, unpadded)
    m1_ref   : (3, W*C, W*C)       bf16  conv1 block-tridiagonal row matrices
    s1/b1    : (1, W*C)            f32   folded BN1 scale / bias (tiled over W)
    m2_ref   : (3, W*C, W*C)       bf16  conv2 block-tridiagonal row matrices
    s2/b2    : (1, W*C)            f32   folded BN2 scale / bias
    out_ref  : (bb, H, W*C)        f32
    xpad_scr : (bb*(H+2), W*C)     bf16  flat H-padded conv1 input
    pad2_scr : (bb*(H+2), W*C)     bf16  flat H-padded conv2 input
    """
    Hp = H + 2
    M = bb * Hp - 2          # rows produced by each batch-stacked conv pass

    s1 = s1_ref[...]
    b1 = b1_ref[...]
    s2 = s2_ref[...]
    b2 = b2_ref[...]

    # ---- build the H-padded bf16 conv1 input (single cast, in-kernel pad) ----
    # Zero the whole slab once (covers every pad row), then write each
    # element's interior rows.  bb*(H+2) bf16 rows of stores: trivially cheap.
    xpad_scr[...] = jnp.zeros_like(xpad_scr)
    for i in range(bb):
        xpad_scr[i * Hp + 1:i * Hp + 1 + H, :] = x_ref[i].astype(xpad_scr.dtype)

    # ---- conv1: three batch-stacked MXU matmuls + BN1 + ReLU ----
    acc1 = jnp.zeros((M, WC), jnp.float32)
    for ky in range(3):
        acc1 = acc1 + jnp.dot(xpad_scr[ky:ky + M, :], m1_ref[ky],
                              preferred_element_type=jnp.float32)
    out1 = jnp.maximum(acc1 * s1 + b1, 0.0)

    # Seam rows (flat row r with r % (H+2) >= H) are garbage; zero-mask them —
    # shifted down by one row they land exactly on the conv2 pad-row slots.
    row_mod = lax.broadcasted_iota(jnp.int32, (M, 1), 0) % Hp
    out1_pad = jnp.where(row_mod < H, out1, 0.0).astype(pad2_scr.dtype)

    zrow = jnp.zeros((1, WC), pad2_scr.dtype)
    pad2_scr[0:1, :] = zrow                       # top pad of element 0
    pad2_scr[bb * Hp - 1:bb * Hp, :] = zrow       # bottom pad of last element
    pad2_scr[1:1 + M, :] = out1_pad

    # ---- conv2: three batch-stacked MXU matmuls + BN2 ----
    acc2 = jnp.zeros((M, WC), jnp.float32)
    for ky in range(3):
        acc2 = acc2 + jnp.dot(pad2_scr[ky:ky + M, :], m2_ref[ky],
                              preferred_element_type=jnp.float32)
    out2 = acc2 * s2 + b2

    # ---- residual add (downsample=None, stride=1, exact f32) + ReLU ----
    # Valid output rows of element i sit at flat rows i*(H+2) .. i*(H+2)+H-1.
    for i in range(bb):
        rows = out2[i * Hp:i * Hp + H, :]
        out_ref[i, :, :] = jnp.maximum(rows + x_ref[i], 0.0).astype(out_ref.dtype)


def _build_row_matrices(wk, W, C, dtype):
    """Conv weights (3, 3, Cin, Cout) -> 3 block-tridiagonal (W*C, W*C) mats.

    M_ky[w_in*C + ci, w_out*C + co] = wk[ky, kx, ci, co] with
    kx = w_in - w_out + 1 (zero outside the 3-tap band), so the horizontal
    taps and the W-boundary "same" padding are both encoded in the matrix.
    """
    mats = []
    for ky in range(3):
        m = jnp.zeros((W * C, W * C), jnp.float32)
        for kx in range(3):
            shift = jnp.eye(W, k=1 - kx, dtype=jnp.float32)   # (w_in, w_out)
            m = m + jnp.kron(shift, wk[ky, kx].astype(jnp.float32))
        mats.append(m)
    return jnp.stack(mats).astype(dtype)


def alphablock_forward(x_nchw, params, eps=1e-5, batch_block=None):
    """Pallas implementation of AlphaBlock.forward (stride=1, no downsample)."""
    (w1, g1, be1, rm1, rv1, w2, g2, be2, rm2, rv2) = params
    B, C, H, W = x_nchw.shape
    WC = W * C
    # Lane-dense layout: each image row is one (or more) full 128-lane vectors.
    assert WC % 128 == 0, "AlphaBlock Pallas kernel assumes W*C % 128 == 0"

    if batch_block is None:
        # One grid step unless two "parallel" steps each fill the 256-row MXU
        # (v7x megacore); avoids pure per-step overhead on single-TC v5e/v6e.
        if B % 2 == 0 and (B // 2) * (H + 2) >= 256:
            batch_block = B // 2
        else:
            batch_block = B
    assert B % batch_block == 0
    grid = (B // batch_block,)

    # NCHW -> lane-dense (B, H, W*C) rows.  No HBM-side zero padding: the H
    # pad rows are built inside the kernel.
    x = jnp.transpose(x_nchw, (0, 2, 3, 1)).astype(jnp.float32).reshape(B, H, WC)

    # Torch conv weight (Cout, Cin, kh, kw) -> (kh, kw, Cin, Cout), then pack
    # into block-tridiagonal per-row matrices (bf16 weights, f32 accumulation).
    w1k = jnp.transpose(w1, (2, 3, 1, 0))
    w2k = jnp.transpose(w2, (2, 3, 1, 0))
    m1m = _build_row_matrices(w1k, W, C, jnp.bfloat16)
    m2m = _build_row_matrices(w2k, W, C, jnp.bfloat16)

    # Fold BatchNorm (inference / running-stats) into per-channel scale/bias,
    # tiled across W so they broadcast over the (rows, W*C) layout.
    inv1 = g1 / jnp.sqrt(rv1 + eps)
    inv2 = g2 / jnp.sqrt(rv2 + eps)
    s1 = jnp.tile(inv1, W).reshape(1, WC).astype(jnp.float32)
    b1 = jnp.tile(be1 - rm1 * inv1, W).reshape(1, WC).astype(jnp.float32)
    s2 = jnp.tile(inv2, W).reshape(1, WC).astype(jnp.float32)
    b2 = jnp.tile(be2 - rm2 * inv2, W).reshape(1, WC).astype(jnp.float32)

    kernel = functools.partial(_alphablock_kernel, H, WC, batch_block)

    out2d = pl.pallas_call(
        kernel,
        out_shape=jax.ShapeDtypeStruct((B, H, WC), jnp.float32),
        grid_spec=pltpu.PrefetchScalarGridSpec(
            num_scalar_prefetch=0,
            grid=grid,
            in_specs=[
                pl.BlockSpec((batch_block, H, WC), lambda g: (g, 0, 0)),
                pl.BlockSpec((3, WC, WC), lambda g: (0, 0, 0)),
                pl.BlockSpec((1, WC), lambda g: (0, 0)),
                pl.BlockSpec((1, WC), lambda g: (0, 0)),
                pl.BlockSpec((3, WC, WC), lambda g: (0, 0, 0)),
                pl.BlockSpec((1, WC), lambda g: (0, 0)),
                pl.BlockSpec((1, WC), lambda g: (0, 0)),
            ],
            out_specs=pl.BlockSpec((batch_block, H, WC), lambda g: (g, 0, 0)),
            scratch_shapes=[
                pltpu.VMEM((batch_block * (H + 2), WC), jnp.bfloat16),
                pltpu.VMEM((batch_block * (H + 2), WC), jnp.bfloat16),
            ],
        ),
        compiler_params=pltpu.CompilerParams(
            dimension_semantics=("parallel",)),
    )(x, m1m, s1, b1, m2m, s2, b2)

    # (B, H, W*C) -> NCHW to match PyTorch output convention.
    return jnp.transpose(out2d.reshape(B, H, W, C), (0, 3, 1, 2))


def _reference_forward(x, params, eps=1e-5):
    """Pure-JAX (XLA) reference mirroring the PyTorch forward (eval-mode BN)."""
    (w1, g1, be1, rm1, rv1, w2, g2, be2, rm2, rv2) = params

    def conv(x, w):
        return lax.conv_general_dilated(
            x, w, window_strides=(1, 1), padding=((1, 1), (1, 1)),
            dimension_numbers=('NCHW', 'OIHW', 'NCHW'))

    def bn(x, g, b, m, v):
        c = x.shape[1]
        g, b, m, v = (a.reshape(1, c, 1, 1) for a in (g, b, m, v))
        return (x - m) / jnp.sqrt(v + eps) * g + b

    out = jax.nn.relu(bn(conv(x, w1), g1, be1, rm1, rv1))
    out = bn(conv(out, w2), g2, be2, rm2, rv2)
    return jax.nn.relu(out + x)


if __name__ == "__main__":
    # Shapes implied by the module: inplanes == planes (residual add with
    # downsample=None), stride=1.  W*C == 128 -> fully lane-dense layout.
    B, C, H, W = 2, 8, 16, 16

    key = jax.random.PRNGKey(0)
    keys = jax.random.split(key, 11)

    x = jax.random.normal(keys[0], (B, C, H, W), jnp.float32)

    # conv1 / conv2 weights: (Cout, Cin, 3, 3), no bias
    w1 = jax.random.normal(keys[1], (C, C, 3, 3), jnp.float32) * 0.1
    w2 = jax.random.normal(keys[2], (C, C, 3, 3), jnp.float32) * 0.1
    # bn1 / bn2 parameters and running statistics (deterministic, synthetic)
    g1 = 1.0 + 0.1 * jax.random.normal(keys[3], (C,), jnp.float32)
    be1 = 0.1 * jax.random.normal(keys[4], (C,), jnp.float32)
    rm1 = 0.1 * jax.random.normal(keys[5], (C,), jnp.float32)
    rv1 = jnp.abs(jax.random.normal(keys[6], (C,), jnp.float32)) + 0.5
    g2 = 1.0 + 0.1 * jax.random.normal(keys[7], (C,), jnp.float32)
    be2 = 0.1 * jax.random.normal(keys[8], (C,), jnp.float32)
    rm2 = 0.1 * jax.random.normal(keys[9], (C,), jnp.float32)
    rv2 = jnp.abs(jax.random.normal(keys[10], (C,), jnp.float32)) + 0.5

    params = (w1, g1, be1, rm1, rv1, w2, g2, be2, rm2, rv2)

    out = alphablock_forward(x, params)
    out = jax.block_until_ready(out)

    ref = jax.block_until_ready(_reference_forward(x, params))
    assert out.shape == (B, C, H, W)
    # Tolerance accounts for the bf16 conv path (f32 accumulation, f32
    # BN/residual); observed errors are O(1e-3).
    assert jnp.allclose(out, ref, atol=5e-2, rtol=5e-2), (
        float(jnp.max(jnp.abs(out - ref))))

    print("KERNEL_OK")
</pallas_src>

<mosaic_0001>
module attributes {stable_mosaic.version = 11 : i64} {
  func.func @_alphablock_kernel(%arg0: i32, %arg1: memref<2x16x128xf32, #tpu.memory_space<vmem>>, %arg2: memref<3x128x128xbf16, #tpu.memory_space<vmem>>, %arg3: memref<1x128xf32, #tpu.memory_space<vmem>>, %arg4: memref<1x128xf32, #tpu.memory_space<vmem>>, %arg5: memref<3x128x128xbf16, #tpu.memory_space<vmem>>, %arg6: memref<1x128xf32, #tpu.memory_space<vmem>>, %arg7: memref<1x128xf32, #tpu.memory_space<vmem>>, %arg8: memref<2x16x128xf32, #tpu.memory_space<vmem>>, %arg9: memref<36x128xbf16, #tpu.memory_space<vmem>>, %arg10: memref<36x128xbf16, #tpu.memory_space<vmem>>) attributes {dimension_semantics = [#tpu.dimension_semantics<parallel>], iteration_bounds = array<i64: 1>, scalar_prefetch = 0 : i64, scratch_operands = 2 : i64, tpu.core_type = #tpu.core_type<tc>, window_params = [{transform_indices = @transform_0, window_bounds = array<i64: 2, 16, 128>}, {pipeline_mode = #tpu.pipeline_mode<synchronous>, transform_indices = @transform_1, window_bounds = array<i64: 3, 128, 128>}, {pipeline_mode = #tpu.pipeline_mode<synchronous>, transform_indices = @transform_2, window_bounds = array<i64: 1, 128>}, {pipeline_mode = #tpu.pipeline_mode<synchronous>, transform_indices = @transform_3, window_bounds = array<i64: 1, 128>}, {pipeline_mode = #tpu.pipeline_mode<synchronous>, transform_indices = @transform_4, window_bounds = array<i64: 3, 128, 128>}, {pipeline_mode = #tpu.pipeline_mode<synchronous>, transform_indices = @transform_5, window_bounds = array<i64: 1, 128>}, {pipeline_mode = #tpu.pipeline_mode<synchronous>, transform_indices = @transform_6, window_bounds = array<i64: 1, 128>}, {transform_indices = @transform_7, window_bounds = array<i64: 2, 16, 128>}]} {
    %c0 = arith.constant 0 : index
    %c0_0 = arith.constant 0 : index
    %0 = vector.load %arg3[%c0, %c0_0] : memref<1x128xf32, #tpu.memory_space<vmem>>, vector<1x128xf32>
    %c0_1 = arith.constant 0 : index
    %c0_2 = arith.constant 0 : index
    %1 = vector.load %arg4[%c0_1, %c0_2] : memref<1x128xf32, #tpu.memory_space<vmem>>, vector<1x128xf32>
    %c0_3 = arith.constant 0 : index
    %c0_4 = arith.constant 0 : index
    %2 = vector.load %arg6[%c0_3, %c0_4] : memref<1x128xf32, #tpu.memory_space<vmem>>, vector<1x128xf32>
    %c0_5 = arith.constant 0 : index
    %c0_6 = arith.constant 0 : index
    %3 = vector.load %arg7[%c0_5, %c0_6] : memref<1x128xf32, #tpu.memory_space<vmem>>, vector<1x128xf32>
    %cst = arith.constant 0.000000e+00 : bf16
    %4 = vector.broadcast %cst : bf16 to vector<36x128xbf16>
    %c0_7 = arith.constant 0 : index
    %c0_8 = arith.constant 0 : index
    %5 = vector.load %arg9[%c0_7, %c0_8] : memref<36x128xbf16, #tpu.memory_space<vmem>>, vector<36x128xbf16>
    tpu.vector_store %arg9[%c0_7, %c0_8], %4 {strides = array<i32>} : memref<36x128xbf16, #tpu.memory_space<vmem>>, vector<36x128xbf16>,
    %c0_9 = arith.constant 0 : index
    %c0_10 = arith.constant 0 : index
    %c0_11 = arith.constant 0 : index
    %6 = vector.load %arg1[%c0_9, %c0_10, %c0_11] : memref<2x16x128xf32, #tpu.memory_space<vmem>>, vector<1x16x128xf32>
    %7 = vector.shape_cast %6 : vector<1x16x128xf32> to vector<16x128xf32>
    %8 = arith.truncf %7 : vector<16x128xf32> to vector<16x128xbf16>
    %c1 = arith.constant 1 : index
    %c0_12 = arith.constant 0 : index
    %9 = vector.load %arg9[%c1, %c0_12] : memref<36x128xbf16, #tpu.memory_space<vmem>>, vector<16x128xbf16>
    tpu.vector_store %arg9[%c1, %c0_12], %8 {strides = array<i32>} : memref<36x128xbf16, #tpu.memory_space<vmem>>, vector<16x128xbf16>,
    %c1_13 = arith.constant 1 : index
    %c0_14 = arith.constant 0 : index
    %c0_15 = arith.constant 0 : index
    %10 = vector.load %arg1[%c1_13, %c0_14, %c0_15] : memref<2x16x128xf32, #tpu.memory_space<vmem>>, vector<1x16x128xf32>
    %11 = vector.shape_cast %10 : vector<1x16x128xf32> to vector<16x128xf32>
    %12 = arith.truncf %11 : vector<16x128xf32> to vector<16x128xbf16>
    %c19 = arith.constant 19 : index
    %c0_16 = arith.constant 0 : index
    %13 = vector.load %arg9[%c19, %c0_16] : memref<36x128xbf16, #tpu.memory_space<vmem>>, vector<16x128xbf16>
    tpu.vector_store %arg9[%c19, %c0_16], %12 {strides = array<i32>} : memref<36x128xbf16, #tpu.memory_space<vmem>>, vector<16x128xbf16>,
    %cst_17 = arith.constant 0.000000e+00 : f32
    %14 = vector.broadcast %cst_17 : f32 to vector<34x128xf32>
    %c0_18 = arith.constant 0 : index
    %c0_19 = arith.constant 0 : index
    %15 = vector.load %arg9[%c0_18, %c0_19] : memref<36x128xbf16, #tpu.memory_space<vmem>>, vector<34x128xbf16>
    %c0_20 = arith.constant 0 : index
    %c0_21 = arith.constant 0 : index
    %c0_22 = arith.constant 0 : index
    %16 = vector.load %arg2[%c0_20, %c0_21, %c0_22] : memref<3x128x128xbf16, #tpu.memory_space<vmem>>, vector<1x128x128xbf16>
    %17 = vector.shape_cast %16 : vector<1x128x128xbf16> to vector<128x128xbf16>
    %cst_23 = arith.constant dense<0.000000e+00> : vector<34x128xf32>
    %18 = tpu.matmul %15, %17, %cst_23 {dimension_numbers = #tpu.dot_dimension_numbers<[1], [0], [0], [1], [0, 0, 1, 1], [], []>} : vector<34x128xbf16>, vector<128x128xbf16>, vector<34x128xf32> -> vector<34x128xf32>
    %19 = arith.addf %14, %18 : vector<34x128xf32>
    %c1_24 = arith.constant 1 : index
    %c0_25 = arith.constant 0 : index
    %20 = vector.load %arg9[%c1_24, %c0_25] : memref<36x128xbf16, #tpu.memory_space<vmem>>, vector<34x128xbf16>
    %c1_26 = arith.constant 1 : index
    %c0_27 = arith.constant 0 : index
    %c0_28 = arith.constant 0 : index
    %21 = vector.load %arg2[%c1_26, %c0_27, %c0_28] : memref<3x128x128xbf16, #tpu.memory_space<vmem>>, vector<1x128x128xbf16>
    %22 = vector.shape_cast %21 : vector<1x128x128xbf16> to vector<128x128xbf16>
    %cst_29 = arith.constant dense<0.000000e+00> : vector<34x128xf32>
    %23 = tpu.matmul %20, %22, %cst_29 {dimension_numbers = #tpu.dot_dimension_numbers<[1], [0], [0], [1], [0, 0, 1, 1], [], []>} : vector<34x128xbf16>, vector<128x128xbf16>, vector<34x128xf32> -> vector<34x128xf32>
    %24 = arith.addf %19, %23 : vector<34x128xf32>
    %c2 = arith.constant 2 : index
    %c0_30 = arith.constant 0 : index
    %25 = vector.load %arg9[%c2, %c0_30] : memref<36x128xbf16, #tpu.memory_space<vmem>>, vector<34x128xbf16>
    %c2_31 = arith.constant 2 : index
    %c0_32 = arith.constant 0 : index
    %c0_33 = arith.constant 0 : index
    %26 = vector.load %arg2[%c2_31, %c0_32, %c0_33] : memref<3x128x128xbf16, #tpu.memory_space<vmem>>, vector<1x128x128xbf16>
    %27 = vector.shape_cast %26 : vector<1x128x128xbf16> to vector<128x128xbf16>
    %cst_34 = arith.constant dense<0.000000e+00> : vector<34x128xf32>
    %28 = tpu.matmul %25, %27, %cst_34 {dimension_numbers = #tpu.dot_dimension_numbers<[1], [0], [0], [1], [0, 0, 1, 1], [], []>} : vector<34x128xbf16>, vector<128x128xbf16>, vector<34x128xf32> -> vector<34x128xf32>
    %29 = arith.addf %24, %28 : vector<34x128xf32>
    %30 = vector.broadcast %0 : vector<1x128xf32> to vector<34x128xf32>
    %31 = arith.mulf %29, %30 : vector<34x128xf32>
    %32 = vector.broadcast %1 : vector<1x128xf32> to vector<34x128xf32>
    %33 = arith.addf %31, %32 : vector<34x128xf32>
    %cst_35 = arith.constant 0.000000e+00 : f32
    %34 = vector.broadcast %cst_35 : f32 to vector<34x128xf32>
    %35 = arith.maximumf %33, %34 : vector<34x128xf32>
    %36 = tpu.iota {dimensions = array<i32: 0>} : vector<34x1xi32>
    %c18_i32 = arith.constant 18 : i32
    %c0_i32 = arith.constant 0 : i32
    %37 = arith.cmpi eq, %c18_i32, %c0_i32 : i32
    %c1_i32 = arith.constant 1 : i32
    %38 = arith.select %37, %c1_i32, %c18_i32 : i32
    %39 = vector.broadcast %38 : i32 to vector<34x1xi32>
    %40 = arith.remsi %36, %39 : vector<34x1xi32>
    %c0_i32_36 = arith.constant 0 : i32
    %41 = vector.broadcast %c0_i32_36 : i32 to vector<34x1xi32>
    %42 = arith.cmpi ne, %40, %41 : vector<34x1xi32>
    %c0_i32_37 = arith.constant 0 : i32
    %43 = vector.broadcast %c0_i32_37 : i32 to vector<34x1xi32>
    %44 = arith.cmpi slt, %40, %43 : vector<34x1xi32>
    %c0_i32_38 = arith.constant 0 : i32
    %45 = arith.cmpi slt, %38, %c0_i32_38 : i32
    %46 = vector.broadcast %45 : i1 to vector<34x1xi1>
    %47 = vector.broadcast %46 : vector<34x1xi1> to vector<34x1xi1>
    %48 = arith.xori %44, %47 : vector<34x1xi1>
    %49 = arith.andi %48, %42 : vector<34x1xi1>
    %50 = vector.broadcast %38 : i32 to vector<34x1xi32>
    %51 = arith.addi %40, %50 : vector<34x1xi32>
    %52 = arith.select %49, %51, %40 : vector<34x1xi1>, vector<34x1xi32>
    %c16_i32 = arith.constant 16 : i32
    %53 = vector.broadcast %c16_i32 : i32 to vector<34x1xi32>
    %54 = arith.cmpi slt, %52, %53 : vector<34x1xi32>
    %cst_39 = arith.constant 0.000000e+00 : f32
    %55 = vector.shape_cast %54 : vector<34x1xi1> to vector<34x1xi1>
    %56 = vector.broadcast %55 : vector<34x1xi1> to vector<34x128xi1>
    %57 = vector.broadcast %cst_39 : f32 to vector<34x128xf32>
    %58 = arith.select %56, %35, %57 : vector<34x128xi1>, vector<34x128xf32>
    %59 = arith.truncf %58 : vector<34x128xf32> to vector<34x128xbf16>
    %cst_40 = arith.constant 0.000000e+00 : bf16
    %60 = vector.broadcast %cst_40 : bf16 to vector<1x128xbf16>
    %c0_41 = arith.constant 0 : index
    %c0_42 = arith.constant 0 : index
    %61 = vector.load %arg10[%c0_41, %c0_42] : memref<36x128xbf16, #tpu.memory_space<vmem>>, vector<1x128xbf16>
    tpu.vector_store %arg10[%c0_41, %c0_42], %60 {strides = array<i32>} : memref<36x128xbf16, #tpu.memory_space<vmem>>, vector<1x128xbf16>,
    %c35 = arith.constant 35 : index
    %c0_43 = arith.constant 0 : index
    %62 = vector.load %arg10[%c35, %c0_43] : memref<36x128xbf16, #tpu.memory_space<vmem>>, vector<1x128xbf16>
    tpu.vector_store %arg10[%c35, %c0_43], %60 {strides = array<i32>} : memref<36x128xbf16, #tpu.memory_space<vmem>>, vector<1x128xbf16>,
    %c1_44 = arith.constant 1 : index
    %c0_45 = arith.constant 0 : index
    %63 = vector.load %arg10[%c1_44, %c0_45] : memref<36x128xbf16, #tpu.memory_space<vmem>>, vector<34x128xbf16>
    tpu.vector_store %arg10[%c1_44, %c0_45], %59 {strides = array<i32>} : memref<36x128xbf16, #tpu.memory_space<vmem>>, vector<34x128xbf16>,
    %cst_46 = arith.constant 0.000000e+00 : f32
    %64 = vector.broadcast %cst_46 : f32 to vector<34x128xf32>
    %c0_47 = arith.constant 0 : index
    %c0_48 = arith.constant 0 : index
    %65 = vector.load %arg10[%c0_47, %c0_48] : memref<36x128xbf16, #tpu.memory_space<vmem>>, vector<34x128xbf16>
    %c0_49 = arith.constant 0 : index
    %c0_50 = arith.constant 0 : index
    %c0_51 = arith.constant 0 : index
    %66 = vector.load %arg5[%c0_49, %c0_50, %c0_51] : memref<3x128x128xbf16, #tpu.memory_space<vmem>>, vector<1x128x128xbf16>
    %67 = vector.shape_cast %66 : vector<1x128x128xbf16> to vector<128x128xbf16>
    %cst_52 = arith.constant dense<0.000000e+00> : vector<34x128xf32>
    %68 = tpu.matmul %65, %67, %cst_52 {dimension_numbers = #tpu.dot_dimension_numbers<[1], [0], [0], [1], [0, 0, 1, 1], [], []>} : vector<34x128xbf16>, vector<128x128xbf16>, vector<34x128xf32> -> vector<34x128xf32>
    %69 = arith.addf %64, %68 : vector<34x128xf32>
    %c1_53 = arith.constant 1 : index
    %c0_54 = arith.constant 0 : index
    %70 = vector.load %arg10[%c1_53, %c0_54] : memref<36x128xbf16, #tpu.memory_space<vmem>>, vector<34x128xbf16>
    %c1_55 = arith.constant 1 : index
    %c0_56 = arith.constant 0 : index
    %c0_57 = arith.constant 0 : index
    %71 = vector.load %arg5[%c1_55, %c0_56, %c0_57] : memref<3x128x128xbf16, #tpu.memory_space<vmem>>, vector<1x128x128xbf16>
    %72 = vector.shape_cast %71 : vector<1x128x128xbf16> to vector<128x128xbf16>
    %cst_58 = arith.constant dense<0.000000e+00> : vector<34x128xf32>
    %73 = tpu.matmul %70, %72, %cst_58 {dimension_numbers = #tpu.dot_dimension_numbers<[1], [0], [0], [1], [0, 0, 1, 1], [], []>} : vector<34x128xbf16>, vector<128x128xbf16>, vector<34x128xf32> -> vector<34x128xf32>
    %74 = arith.addf %69, %73 : vector<34x128xf32>
    %c2_59 = arith.constant 2 : index
    %c0_60 = arith.constant 0 : index
    %75 = vector.load %arg10[%c2_59, %c0_60] : memref<36x128xbf16, #tpu.memory_space<vmem>>, vector<34x128xbf16>
    %c2_61 = arith.constant 2 : index
    %c0_62 = arith.constant 0 : index
    %c0_63 = arith.constant 0 : index
    %76 = vector.load %arg5[%c2_61, %c0_62, %c0_63] : memref<3x128x128xbf16, #tpu.memory_space<vmem>>, vector<1x128x128xbf16>
    %77 = vector.shape_cast %76 : vector<1x128x128xbf16> to vector<128x128xbf16>
    %cst_64 = arith.constant dense<0.000000e+00> : vector<34x128xf32>
    %78 = tpu.matmul %75, %77, %cst_64 {dimension_numbers = #tpu.dot_dimension_numbers<[1], [0], [0], [1], [0, 0, 1, 1], [], []>} : vector<34x128xbf16>, vector<128x128xbf16>, vector<34x128xf32> -> vector<34x128xf32>
    %79 = arith.addf %74, %78 : vector<34x128xf32>
    %80 = vector.broadcast %2 : vector<1x128xf32> to vector<34x128xf32>
    %81 = arith.mulf %79, %80 : vector<34x128xf32>
    %82 = vector.broadcast %3 : vector<1x128xf32> to vector<34x128xf32>
    %83 = arith.addf %81, %82 : vector<34x128xf32>
    %84 = vector.extract_strided_slice %83 {offsets = [0, 0], sizes = [16, 128], strides = [1, 1]} : vector<34x128xf32> to vector<16x128xf32>
    %c0_65 = arith.constant 0 : index
    %c0_66 = arith.constant 0 : index
    %c0_67 = arith.constant 0 : index
    %85 = vector.load %arg1[%c0_65, %c0_66, %c0_67] : memref<2x16x128xf32, #tpu.memory_space<vmem>>, vector<1x16x128xf32>
    %86 = vector.shape_cast %85 : vector<1x16x128xf32> to vector<16x128xf32>
    %87 = arith.addf %84, %86 : vector<16x128xf32>
    %cst_68 = arith.constant 0.000000e+00 : f32
    %88 = vector.broadcast %cst_68 : f32 to vector<16x128xf32>
    %89 = arith.maximumf %87, %88 : vector<16x128xf32>
    %c0_69 = arith.constant 0 : index
    %c0_70 = arith.constant 0 : index
    %c0_71 = arith.constant 0 : index
    %90 = vector.load %arg8[%c0_69, %c0_70, %c0_71] : memref<2x16x128xf32, #tpu.memory_space<vmem>>, vector<1x16x128xf32>
    %91 = vector.shape_cast %90 : vector<1x16x128xf32> to vector<16x128xf32>
    %92 = vector.shape_cast %89 : vector<16x128xf32> to vector<1x16x128xf32>
    tpu.vector_store %arg8[%c0_69, %c0_70, %c0_71], %92 {strides = array<i32>} : memref<2x16x128xf32, #tpu.memory_space<vmem>>, vector<1x16x128xf32>,
    %93 = vector.extract_strided_slice %83 {offsets = [18, 0], sizes = [16, 128], strides = [1, 1]} : vector<34x128xf32> to vector<16x128xf32>
    %c1_72 = arith.constant 1 : index
    %c0_73 = arith.constant 0 : index
    %c0_74 = arith.constant 0 : index
    %94 = vector.load %arg1[%c1_72, %c0_73, %c0_74] : memref<2x16x128xf32, #tpu.memory_space<vmem>>, vector<1x16x128xf32>
    %95 = vector.shape_cast %94 : vector<1x16x128xf32> to vector<16x128xf32>
    %96 = arith.addf %93, %95 : vector<16x128xf32>
    %cst_75 = arith.constant 0.000000e+00 : f32
    %97 = vector.broadcast %cst_75 : f32 to vector<16x128xf32>
    %98 = arith.maximumf %96, %97 : vector<16x128xf32>
    %c1_76 = arith.constant 1 : index
    %c0_77 = arith.constant 0 : index
    %c0_78 = arith.constant 0 : index
    %99 = vector.load %arg8[%c1_76, %c0_77, %c0_78] : memref<2x16x128xf32, #tpu.memory_space<vmem>>, vector<1x16x128xf32>
    %100 = vector.shape_cast %99 : vector<1x16x128xf32> to vector<16x128xf32>
    %101 = vector.shape_cast %98 : vector<16x128xf32> to vector<1x16x128xf32>
    tpu.vector_store %arg8[%c1_76, %c0_77, %c0_78], %101 {strides = array<i32>} : memref<2x16x128xf32, #tpu.memory_space<vmem>>, vector<1x16x128xf32>,
    return
  }
  func.func @transform_0(%arg0: i32) -> (i32, i32, i32) {
    %c0_i32 = arith.constant 0 : i32
    %c0_i32_0 = arith.constant 0 : i32
    %c0_i32_1 = arith.constant 0 : i32
    return %arg0, %c0_i32, %c0_i32_0 : i32, i32, i32
  }
  func.func @transform_1(%arg0: i32) -> (i32, i32, i32) {
    %c0_i32 = arith.constant 0 : i32
    %c0_i32_0 = arith.constant 0 : i32
    %c0_i32_1 = arith.constant 0 : i32
    %c0_i32_2 = arith.constant 0 : i32
    return %c0_i32, %c0_i32_0, %c0_i32_1 : i32, i32, i32
  }
  func.func @transform_2(%arg0: i32) -> (i32, i32) {
    %c0_i32 = arith.constant 0 : i32
    %c0_i32_0 = arith.constant 0 : i32
    %c0_i32_1 = arith.constant 0 : i32
    return %c0_i32, %c0_i32_0 : i32, i32
  }
  func.func @transform_3(%arg0: i32) -> (i32, i32) {
    %c0_i32 = arith.constant 0 : i32
    %c0_i32_0 = arith.constant 0 : i32
    %c0_i32_1 = arith.constant 0 : i32
    return %c0_i32, %c0_i32_0 : i32, i32
  }
  func.func @transform_4(%arg0: i32) -> (i32, i32, i32) {
    %c0_i32 = arith.constant 0 : i32
    %c0_i32_0 = arith.constant 0 : i32
    %c0_i32_1 = arith.constant 0 : i32
    %c0_i32_2 = arith.constant 0 : i32
    return %c0_i32, %c0_i32_0, %c0_i32_1 : i32, i32, i32
  }
  func.func @transform_5(%arg0: i32) -> (i32, i32) {
    %c0_i32 = arith.constant 0 : i32
    %c0_i32_0 = arith.constant 0 : i32
    %c0_i32_1 = arith.constant 0 : i32
    return %c0_i32, %c0_i32_0 : i32, i32
  }
  func.func @transform_6(%arg0: i32) -> (i32, i32) {
    %c0_i32 = arith.constant 0 : i32
    %c0_i32_0 = arith.constant 0 : i32
    %c0_i32_1 = arith.constant 0 : i32
    return %c0_i32, %c0_i32_0 : i32, i32
  }
  func.func @transform_7(%arg0: i32) -> (i32, i32, i32) {
    %c0_i32 = arith.constant 0 : i32
    %c0_i32_0 = arith.constant 0 : i32
    %c0_i32_1 = arith.constant 0 : i32
    return %arg0, %c0_i32, %c0_i32_0 : i32, i32, i32
  }
}

</mosaic_0001>

<bundles_post_ra>
// kernel: tpu_custom_call.1
= control target key start
LH: loop header
LB: loop body
LE: loop exit
PB: predicated region body
PF: predicated region fallthrough
CT: control target
= control target key end

     0   :  { %12 = vsyncpa [#allocation5], 0  ;;  %s2130_s0 = inlined_call_operand.hbm [shape: f32[2,16,128], index: 0, kind: input, shape index: {}]   ;;  %s2131_s1 = inlined_call_operand.hbm [shape: bf16[3,128,128], index: 1, kind: input, shape index: {}]   ;;  %s2132_s2 = inlined_call_operand.vmem [shape: f32[1,128], index: 2, kind: input, shape index: {}]   ;;  %s2133_s3 = inlined_call_operand.vmem [shape: f32[1,128], index: 3, kind: input, shape index: {}]   ;;  %s2134_s4 = inlined_call_operand.hbm [shape: bf16[3,128,128], index: 4, kind: input, shape index: {}]   ;;  %s2135_s5 = inlined_call_operand.vmem [shape: f32[1,128], index: 5, kind: input, shape index: {}]   ;;  %s2136_s6 = inlined_call_operand.vmem [shape: f32[1,128], index: 6, kind: input, shape index: {}]   ;;  %s2137_s7 = inlined_call_operand.hbm [shape: f32[2,16,128], index: 7, kind: output, shape index: {}]  }
   0x1   :  { %13 = vsyncpa [#allocation8], 0 }
   0x2   :  { %14 = vsyncpa [#allocation6], 0  ;;  %s1791_s24 = smov [#allocation7]  }
   0x3   :  { %s32_s25 = sshll.u32 %s1791_s24, 4  ;;  %s33_s25 = int_to_ptr.vmem [resolvable:$true] %s32_s25 }
   0x4   :  { %s1713_s26 = scalar_lea.vmem %s33_s25, 3072  ;;  %p1718_p1 = scmp.lt.s32.totalorder %s33_s25, %s33_s25 }
   0x5   :  { %p1714_p0 = scmp.ne.s32.totalorder %s33_s25, %s1713_s26  ;;  %p1719_p2 = scmp.lt.s32.totalorder %s1713_s26, %s1713_s26 }
   0x7   :  { %p1720_p3 = por %p1719_p2, %p1718_p1 }
   0x9   :  { %p1721_p4 = pnand %p1720_p3, %p1714_p0 }
   0xb   :  { %1724 = shalt.err (!%p1721_p4)
}
   0xc   :  { %s1792_s27 = smov 64   ;;  %s1793_s28 = smov 4  }
   0xd   :  { %38 = dma.hbm_to_vmem [thread:$0]  %s2131_s1, 3072, %s33_s25, [#allocation8], %s1792_s27, %s1792_s27, %s1793_s28  }
   0xe   :  { %s1794_s8 = smov [#allocation4]  }
   0xf   :  { %s20_s9 = sshll.u32 %s1794_s8, 4  ;;  %s21_s9 = int_to_ptr.vmem [resolvable:$true] %s20_s9 }
  0x10   :  { %s1733_s10 = scalar_lea.vmem %s21_s9, 512  ;;  %p1738_p6 = scmp.lt.s32.totalorder %s21_s9, %s21_s9 }
  0x11   :  { %p1734_p5 = scmp.ne.s32.totalorder %s21_s9, %s1733_s10  ;;  %p1739_p7 = scmp.lt.s32.totalorder %s1733_s10, %s1733_s10 }
  0x13   :  { %p1740_p8 = por %p1739_p7, %p1738_p6 }
  0x15   :  { %p1741_p9 = pnand %p1740_p8, %p1734_p5 }
  0x17   :  { %1744 = shalt.err (!%p1741_p9)
}
  0x18   :  { %s1795_s11 = smov 128   ;;  %s1796_s12 = smov 8  }
  0x19   :  { %26 = dma.hbm_to_vmem [thread:$0]  %s2130_s0, 512, %s21_s9, [#allocation5], %s1795_s11, %s1795_s11, %s1796_s12  }
  0x1a   :  { %s1797_s1 = smov [#allocation9]  }
  0x1b   :  { %s48_s15 = sshll.u32 %s1797_s1, 4  ;;  %s49_s15 = int_to_ptr.vmem [resolvable:$true] %s48_s15 }
  0x1c   :  { %s1753_s16 = scalar_lea.vmem %s49_s15, 3072  ;;  %p1758_p11 = scmp.lt.s32.totalorder %s49_s15, %s49_s15 }
  0x1d   :  { %p1754_p10 = scmp.ne.s32.totalorder %s49_s15, %s1753_s16  ;;  %p1759_p12 = scmp.lt.s32.totalorder %s1753_s16, %s1753_s16 }
  0x1f   :  { %p1760_p13 = por %p1759_p12, %p1758_p11 }
  0x21   :  { %p1761_p0 = pnand %p1760_p13, %p1754_p10 }
  0x23   :  { %1764 = shalt.err (!%p1761_p0)
}
  0x24   :  { %54 = dma.hbm_to_vmem [thread:$0]  %s2134_s4, 3072, %s49_s15, [#allocation8], %s1792_s27, %s1792_s27, %s1793_s28  }
  0x25   :  { %1785 = dma.done.wait [#allocation5], 512  }
  0x26   :  { %1786 = vsyncadd [#allocation5], 4294966784 }
  0x27   :  { %1787 = dma.done.wait [#allocation8], 6144  }
  0x28   :  { %1788 = vsyncadd [#allocation8], 4294961152  ;;  %v1798_v0 = vmov 0.0   ;;  %v1799_v1 = vmov 0   ;;  %vm1800_vm0 = vmmov 0   ;;  %v1647_v2 = vld [vmem:[#allocation7 + $0x78] sm:$0xff]  }
  0x29   :  { %1458 = vmatprep.subr.bf16.mxu0 %v1798_v0  ;;  %1486 = vmatprep.subr.bf16.mxu1 %v1798_v0  ;;  %73 = vst [vmem:[#allocation2] sm:$0xf] %v1799_v1  ;;  %74 = vst [vmem:[#allocation2 + $0x4] sm:$0xf] %v1799_v1  ;;  %v1648_v3 = vld [vmem:[#allocation7 + $0x38] sm:$0xff]   ;;  %v1649_v4 = vld [vmem:[#allocation7 + $0x70] sm:$0xff]  }
  0x2a   :  { %75 = vst [vmem:[#allocation2 + $0x8] sm:$0xf] %v1799_v1  ;;  %76 = vst [vmem:[#allocation2 + $0xc] sm:$0xf] %v1799_v1  ;;  %1474 = vmatprep.mubr.msk.bf16.mxu0 %vm1800_vm0, %v1798_v0  ;;  %1502 = vmatprep.mubr.msk.bf16.mxu1 %vm1800_vm0, %v1798_v0  ;;  %v1650_v5 = vld [vmem:[#allocation7 + $0x30] sm:$0xff]   ;;  %v1651_v6 = vld [vmem:[#allocation7 + $0x68] sm:$0xff]  }
  0x2b   :  { %77 = vst [vmem:[#allocation2 + $0x10] sm:$0x3] %v1799_v1  ;;  %1459 = vmatpush3.bf16.msra.mxu0 %v1647_v2  ;;  %1487 = vmatpush3.bf16.msra.mxu1 %v1648_v3  ;;  %v1652_v7 = vld [vmem:[#allocation7 + $0x28] sm:$0xff]   ;;  %vm86_vm1 = vsmask.f32 256  ;;  %v1653_v8 = vld [vmem:[#allocation7 + $0x60] sm:$0xff]  }
  0x2c   :  { %1460 = vmatprep.subr.bf16.mxu0 %v1798_v0  ;;  %1488 = vmatprep.subr.bf16.mxu1 %v1798_v0  ;;  %v1654_v9 = vld [vmem:[#allocation7 + $0x20] sm:$0xff]   ;;  %vm87_vm2 = vsmask.f32 4368  ;;  %vm110_vm3 = vsmask.f32 7938  ;;  %v1655_v10 = vld [vmem:[#allocation7 + $0x58] sm:$0xff]  }
  0x2d   :  { %vm109_vm4 = vcmask 1043456   ;;  %v1656_v11 = vld [vmem:[#allocation7 + $0x18] sm:$0xff]   ;;  %vm116_vm5 = vcmask 1040384   ;;  %v78_v12 = vld [vmem:[#allocation4] sm:$0xff]  ;;  %v79_v13 = vld [vmem:[#allocation4 + $0x8] sm:$0xff]  ;;  %vm155_vm9 = vcmask 1043457  }
  0x2e   :  { %vm130_vm6 = vsmask.f32 1280  ;;  %vm131_vm7 = vsmask.f32 5392  ;;  %v1383_v14 = vpack.c.bf16 %v78_v12, %v78_v12  ;;  %v1384_v15 = vpack.c.bf16 %v79_v13, %v79_v13  ;;  %vm1870_vm8 = vmor %vm86_vm1, %vm87_vm2  ;;  %v122_v17 = vld [vmem:[#allocation4 + $0x10] sm:$0xff]  ;;  %v123_v18 = vld [vmem:[#allocation4 + $0x18] sm:$0xff] }
  0x2f   :  { %1461 = vmatpush3.bf16.msra.mxu0 %v1649_v4  ;;  %1489 = vmatpush3.bf16.msra.mxu1 %v1650_v5  ;;  %vm156_vm10 = vsmask.f32 7942  ;;  %v1657_v19 = vld [vmem:[#allocation7 + $0x50] sm:$0xff]   ;;  %v1385_v20 = vpack.c.bf16 %v122_v17, %v122_v17  ;;  %v1386_v21 = vpack.c.bf16 %v123_v18, %v123_v18  ;;  %vm162_vm11 = vcmask 1041408   ;;  %vm1877_vm12 = vmand %vm109_vm4, %vm110_vm3  ;;  %v1659_v28 = vld [vmem:[#allocation7 + $0x48] sm:$0xff]  }
  0x30   :  { %1462 = vmatprep.subr.bf16.mxu0 %v1798_v0  ;;  %1490 = vmatprep.subr.bf16.mxu1 %v1798_v0  ;;  %v1658_v22 = vld [vmem:[#allocation7 + $0x10] sm:$0xff]   ;;  %v90_v23 = vshrl.u32 %v1383_v14, 16  ;;  %v93_v24 = vshll.u32 %v1383_v14, 16  ;;  %v98_v25 = vshrl.u32 %v1384_v15, 16  ;;  %v101_v26 = vshll.u32 %v1384_v15, 16  ;;  %vm1884_vm13 = vmand %vm116_vm5, %vm86_vm1  ;;  %v1660_v44 = vld [vmem:[#allocation7 + $0x8] sm:$0xff]  }
  0x31   :  { %v112_v29 = vld [vmem:[#allocation2] sm:$0xf]  ;;  %v118_v31 = vld [vmem:[#allocation2 + $0x8] sm:$0x1]  ;;  %v134_v32 = vshrl.u32 %v1385_v20, 16  ;;  %v137_v33 = vshll.u32 %v1385_v20, 16  ;;  %vm1890_vm14 = vmor %vm130_vm6, %vm131_vm7 }
  0x32   :  { %v143_v34 = vshrl.u32 %v1386_v21, 16  ;;  %v146_v35 = vshll.u32 %v1386_v21, 16  ;;  %v92_v36 = vrot.slane %v90_v23, 7  ;;  %v100_v37 = vrot.slane %v98_v25, 7  ;;  %vm1896_vm15 = vmand %vm155_vm9, %vm156_vm10  ;;  %v158_v49 = vld [vmem:[#allocation2 + $0x8] sm:$0xe] }
  0x33   :  { %1463 = vmatpush3.bf16.msra.mxu0 %v1651_v6  ;;  %1491 = vmatpush3.bf16.msra.mxu1 %v1652_v7  ;;  %v136_v39 = vrot.slane %v134_v32, 6  ;;  %v139_v40 = vrot.slane %v137_v33, 7  ;;  %vm1903_vm1 = vmand %vm162_vm11, %vm130_vm6  ;;  %v164_v56 = vld [vmem:[#allocation2 + $0x10] sm:$0x3]  ;;  %v1661_v57 = vld [vmem:[#allocation7 + $0x40] sm:$0xff]   ;;  %vm481_vm3 = vcmask 1046528  }
  0x34   :  { %1464 = vmatprep.subr.bf16.mxu0 %v1798_v0  ;;  %1492 = vmatprep.subr.bf16.mxu1 %v1798_v0  ;;  %v145_v41 = vrot.slane %v143_v34, 6  ;;  %v148_v42 = vrot.slane %v146_v35, 7  ;;  %v95_v45 = vor.u32 %v93_v24, %v92_v36  ;;  %v96_v46 = vrot.slane %v92_v36, 4  ;;  %v1662_v58 = vld [vmem:[#allocation7] sm:$0xff]   ;;  %v1666_v18 = vld [vmem:[#allocation7 + $0xb0] sm:$0xff]   ;;  %v1667_v20 = vld [vmem:[#allocation7 + $0xa8] sm:$0xff]  }
  0x35   :  { %v103_v47 = vor.u32 %v101_v26, %v100_v37  ;;  %v105_v48 = vrot.slane %v100_v37, 4  ;;  %v140_v51 = vor.u32 %v139_v40, %v136_v39  ;;  %vm219_vm2 = vsmask.f32 7424  ;;  %v1669_v24 = vld [vmem:[#allocation7 + $0xa0] sm:$0xff]   ;;  %v1670_v26 = vld [vmem:[#allocation7 + $0x98] sm:$0xff]   ;;  %v1677_v40 = vld [vmem:[#allocation9 + $0x30] sm:$0xff]  }
  0x36   :  { %v149_v52 = vor.u32 %v148_v42, %v145_v41  ;;  %v113_v54 = vsel %vm1877_vm12, %v95_v45, %v112_v29  ;;  %v1674_v33 = vld [vmem:[#allocation7 + $0x80] sm:$0xff]   ;;  %v1676_v39 = vld [vmem:[#allocation9 + $0x38] sm:$0xff]   ;;  %v735_v41 = vld [vmem:[#allocation3] sm:$0x1]  ;;  %vm738_vm4 = vcmask 1041409  }
  0x37   :  { %1465 = vmatpush3.bf16.msra.mxu0 %v1653_v8  ;;  %1493 = vmatpush3.bf16.msra.mxu1 %v1654_v9  ;;  %v104_v53 = vsel %vm1870_vm8, %v96_v46, %v103_v47  ;;  %v119_v55 = vsel %vm1884_vm13, %v105_v48, %v118_v31  ;;  %114 = vst [vmem:[#allocation2] sm:$0xf] %v113_v54  ;;  %v141_v59 = vrot.slane %v140_v51, 4  ;;  %v1673_v31 = vld [vmem:[#allocation7 + $0x88] sm:$0xff]   ;;  %v736_v43 = vsel %vm1884_vm13, 0, %v735_v41  ;;  %v1680_v45 = vld [vmem:[#allocation9 + $0x20] sm:$0xff]   ;;  %vm739_vm5 = vmand %vm738_vm4, %vm156_vm10 }
  0x38   :  { %1466 = vmatprep.subr.bf16.mxu0 %v1798_v0  ;;  %1494 = vmatprep.subr.bf16.mxu1 %v1798_v0  ;;  %115 = vst [vmem:[#allocation2 + $0x4] sm:$0xf] %v104_v53  ;;  %120 = vst [vmem:[#allocation2 + $0x8] sm:$0x1] %v119_v55  ;;  %v159_v60 = vsel %vm1896_vm15, %v140_v51, %v158_v49  ;;  %v151_v61 = vrot.slane %v149_v52, 4  ;;  %v1678_v42 = vld [vmem:[#allocation9 + $0x28] sm:$0xff]  }
  0x39   :  { %160 = vst [vmem:[#allocation2 + $0x8] sm:$0xe] %v159_v60  ;;  %v150_v62 = vsel %vm1890_vm14, %v141_v59, %v149_v52  ;;  %737 = vst [vmem:[#allocation3] sm:$0x1] %v736_v43  ;;  %v1681_v46 = vld [vmem:[#allocation9 + $0x70] sm:$0xff]   ;;  %v1682_v47 = vld [vmem:[#allocation9 + $0x18] sm:$0xff]  }
  0x3a   :  { %v165_v63 = vsel %vm1903_vm1, %v151_v61, %v164_v56  ;;  %161 = vst [vmem:[#allocation2 + $0xc] sm:$0xf] %v150_v62  ;;  %v1683_v30 = vld [vmem:[#allocation9 + $0x68] sm:$0xff]   ;;  %v1684_v48 = vld [vmem:[#allocation9 + $0x10] sm:$0xff]   ;;  %v1685_v49 = vld [vmem:[#allocation9 + $0x60] sm:$0xff]  }
  0x3b   :  { %1467 = vmatpush3.bf16.msra.mxu0 %v1655_v10  ;;  %1495 = vmatpush3.bf16.msra.mxu1 %v1656_v11  ;;  %166 = vst [vmem:[#allocation2 + $0x10] sm:$0x3] %v165_v63  ;;  %v1665_v10 = vld [vmem:[#allocation7 + $0xb8] sm:$0xff]   ;;  %v1686_v51 = vld [vmem:[#allocation9 + $0x8] sm:$0xff]   ;;  %v1688_v55 = vld [vmem:[#allocation9] sm:$0xff]  }
  0x3c   :  { %1468 = vmatprep.subr.bf16.mxu0 %v1798_v0  ;;  %1496 = vmatprep.subr.bf16.mxu1 %v1798_v0  ;;  %v740_v52 = vld [vmem:[#allocation3 + $0x10] sm:$0x2]  ;;  %v1690_v56 = vld [vmem:[#allocation9 + $0x50] sm:$0xff]  }
  0x3d   :  { %v741_v53 = vsel %vm739_vm5, 0, %v740_v52  ;;  %v1687_v54 = vld [vmem:[#allocation9 + $0x58] sm:$0xff]  }
  0x3e   :  { %v167_v1 = vld [vmem:[#allocation2] sm:$0xf]  ;;  %742 = vst [vmem:[#allocation3 + $0x10] sm:$0x2] %v741_v53 }
  0x3f   :  { %1469 = vmatpush3.bf16.msra.mxu0 %v1657_v19  ;;  %1497 = vmatpush3.bf16.msra.mxu1 %v1658_v22  ;;  %v168_v2 = vld [vmem:[#allocation2 + $0x4] sm:$0xf]  ;;  %v460_v29 = vld [vmem:[#allocation2] sm:$0xe]  ;;  %v2019_v53 = vld [vmem:[%s2132_s2] ss:$0 sm:$0xff] }
  0x40   :  { %1470 = vmatprep.subr.bf16.mxu0 %v1798_v0  ;;  %1498 = vmatprep.subr.bf16.mxu1 %v1798_v0  ;;  %v1316_v3 = vcombine.low %v167_v1, %v168_v2  ;;  %v1336_v32 = vcombine.low %v460_v29, %v168_v2  ;;  %v626_v1 = vlaneseq }
  0x41   :  { %v1924_v4 = vld [vmem:[#allocation2 + $0x8] sm:$0xff]  }
  0x42   :  { %v221_v5 = vshrl.u32 %v1316_v3, 16  ;;  %v223_v6 = vshll.u32 %v1316_v3, 16  ;;  %v1668_v7 = vld [vmem:[#allocation2 + $0x10] ss:$0 sps:$4 sm:$0x33]   ;;  %v228_v9 = vshll.u32 %v1924_v4, 16 }
  0x43   :  { %1471 = vmatpush3.bf16.msra.mxu0 %v1659_v28  ;;  %1499 = vmatpush3.bf16.msra.mxu1 %v1660_v44  ;;  %v236_v11 = vshll.u32 %v1668_v7, 16  ;;  %v232_v14 = vshrl.u32 %v1924_v4, 16  ;;  %v1672_v21 = vld [vmem:[#allocation2 + $0x10] ss:$0 sps:$4 sm:$0x11]   ;;  %v240_v23 = vshrl.u32 %v1668_v7, 16 }
  0x44   :  { %1472 = vmatprep.subr.bf16.mxu0 %v1798_v0  ;;  %1500 = vmatprep.subr.bf16.mxu1 %v1798_v0  ;;  %v225_v8 = vrot.slane %v223_v6, 1  ;;  %v230_v13 = vrot.slane %v228_v9, 1  ;;  %v1671_v28 = vld [vmem:[#allocation7 + $0x90] sm:$0xff]   ;;  %v482_v34 = vrot.slane %v1336_v32, 1  ;;  %v483_v35 = vrot.slane %v1924_v4, 1  ;;  %v1679_v44 = vld [vmem:[#allocation9 + $0x78] sm:$0xff]  }
  0x45   :  { %v238_v15 = vrot.slane %v236_v11, 1  ;;  %v485_v37 = vrot.slane %v1668_v7, 1  ;;  %v627_v6 = vshrl.u32 %v626_v1, 7 }
  0x46   :  { %v226_v12 = vor.u32 %v225_v8, %v221_v5  ;;  %v234_v19 = vor.u32 %v232_v14, %v230_v13  ;;  %v484_v36 = vsel %vm481_vm3, %v482_v34, %v483_v35 }
  0x47   :  { %1473 = vmatpush3.bf16.msra.mxu0 %v1661_v57  ;;  %1501 = vmatpush3.bf16.msra.mxu1 %v1662_v58  ;;  %v242_v25 = vor.u32 %v240_v23, %v238_v15  ;;  %v486_v38 = vsel %vm481_vm3, %v483_v35, %v485_v37  ;;  %v1691_v57 = vld [vmem:[#allocation9 + $0x48] sm:$0xff]   ;;  %v1693_v58 = vld [vmem:[#allocation9 + $0x40] sm:$0xff]   ;;  %v630_v23 = vadd.s32 24, %v627_v6  ;;  %v631_v35 = vadd.s32 32, %v627_v6 }
  0x48   :  { %1514 = vmatprep.subr.bf16.mxu0 %v1798_v0  ;;  %1542 = vmatprep.subr.bf16.mxu1 %v1798_v0  ;;  %v231_v17 = vsel %vm219_vm2, %v226_v12, %v230_v13  ;;  %v239_v22 = vsel %vm219_vm2, %v234_v19, %v238_v15  ;;  %v1986_v11 = vmul.u32.u64.low 3817748708, %v627_v6  ;;  %v1987_v12 = vmul.u32.u64.high 3817748708, %v627_v6, %v1986_v11 }
  0x49   :  { %v628_v13 = vadd.s32 8, %v627_v6 }
  0x4a   :  { %1503 = vmatmul.mubr.bf16.vlgmr.msra.gmra.mxu1 %v1316_v3  ;;  %1475 = vmatmul.mubr.bf16.vlgmr.msra.gmra.mxu0 %v231_v17 }
  0x4b   :  { %1506 = vmatprep.mubr.msk.bf16.mxu1 %vm1800_vm0, %v1798_v0  ;;  %1515 = vmatpush3.bf16.msra.mxu0 %v1665_v10 }
  0x4c   :  { %1478 = vmatprep.mubr.msk.bf16.mxu0 %vm1800_vm0, %v1798_v0  ;;  %1516 = vmatprep.subr.bf16.mxu0 %v1798_v0 }
  0x4d   :  { %1543 = vmatpush3.bf16.msra.mxu1 %v1679_v44 }
  0x4e   :  { %1544 = vmatprep.subr.bf16.mxu1 %v1798_v0 }
  0x4f   :  { %1517 = vmatpush3.bf16.msra.mxu0 %v1666_v18  ;;  %v629_v18 = vadd.s32 16, %v627_v6 }
  0x50   :  { %1518 = vmatprep.subr.bf16.mxu0 %v1798_v0 }
  0x51   :  { %1545 = vmatpush3.bf16.msra.mxu1 %v1681_v46 }
  0x52   :  { %1507 = vmatmul.mubr.bf16.gmra.mxu1 %v1924_v4  ;;  %1479 = vmatmul.mubr.bf16.gmra.mxu0 %v239_v22 }
  0x53   :  { %1510 = vmatprep.mubr.msk.bf16.mxu1 %vm1800_vm0, %v1798_v0  ;;  %1519 = vmatpush3.bf16.msra.mxu0 %v1667_v20 }
  0x54   :  { %1482 = vmatprep.mubr.msk.bf16.mxu0 %vm1800_vm0, %v1798_v0  ;;  %1520 = vmatprep.subr.bf16.mxu0 %v1798_v0 }
  0x55   :  { %1546 = vmatprep.subr.bf16.mxu1 %v1798_v0 }
  0x56   :  { %1547 = vmatpush3.bf16.msra.mxu1 %v1683_v30 }
  0x57   :  { %1521 = vmatpush3.bf16.msra.mxu0 %v1669_v24  ;;  %1548 = vmatprep.subr.bf16.mxu1 %v1798_v0 }
  0x58   :  { %1522 = vmatprep.subr.bf16.mxu0 %v1798_v0 }
  0x5a   :  { %1511 = vmatmul.mubr.bf16.gmra.mxu1 %v1672_v21  ;;  %1483 = vmatmul.mubr.bf16.gmra.mxu0 %v242_v25  ;;  %v1993_v20 = vmul.u32.u64.low 3817748708, %v628_v13  ;;  %v1994_v21 = vmul.u32.u64.high 3817748708, %v628_v13, %v1993_v20 }
  0x5b   :  { %1558 = vmatprep.mubr.msk.bf16.mxu1 %vm1800_vm0, %v1798_v0  ;;  %1523 = vmatpush3.bf16.msra.mxu0 %v1670_v26  ;;  %v638_v26 = vshrl.u32 %v1987_v12, 4 }
  0x5c   :  { %1530 = vmatprep.mubr.msk.bf16.mxu0 %vm1800_vm0, %v1798_v0  ;;  %1524 = vmatprep.subr.bf16.mxu0 %v1798_v0 }
  0x5d   :  { %1549 = vmatpush3.bf16.msra.mxu1 %v1685_v49 }
  0x5e   :  { %1550 = vmatprep.subr.bf16.mxu1 %v1798_v0 }
  0x5f   :  { %1525 = vmatpush3.bf16.msra.mxu0 %v1671_v28  ;;  %v1999_v28 = vmul.u32.u64.low 3817748708, %v629_v18  ;;  %v2000_v29 = vmul.u32.u64.high 3817748708, %v629_v18, %v1999_v28 }
  0x60   :  { %1526 = vmatprep.subr.bf16.mxu0 %v1798_v0 }
  0x61   :  { %1551 = vmatpush3.bf16.msra.mxu1 %v1687_v54  ;;  %v660_v43 = vshrl.u32 %v2000_v29, 4 }
  0x62   :  { %1552 = vmatprep.subr.bf16.mxu1 %v1798_v0 }
  0x63   :  { %1527 = vmatpush3.bf16.msra.mxu0 %v1673_v31  ;;  %v661_v46 = vmul.u32 18, %v660_v43 }
  0x64   :  { %1528 = vmatprep.subr.bf16.mxu0 %v1798_v0 }
  0x65   :  { %1553 = vmatpush3.bf16.msra.mxu1 %v1690_v56 }
  0x66   :  { %1554 = vmatprep.subr.bf16.mxu1 %v1798_v0 }
  0x67   :  { %1529 = vmatpush3.bf16.msra.mxu0 %v1674_v33  ;;  %v2002_v33 = vmul.u32.u64.low 3817748708, %v630_v23  ;;  %v2003_v34 = vmul.u32.u64.high 3817748708, %v630_v23, %v2002_v33 }
  0x68   :  { %1570 = vmatprep.subr.bf16.mxu0 %v1798_v0 }
  0x69   :  { %1555 = vmatpush3.bf16.msra.mxu1 %v1691_v57  ;;  %v2024_v57 = vld [vmem:[%s2133_s3] ss:$0 sm:$0xff] }
  0x6a   :  { %1531 = vmatmul.mubr.bf16.vlgmr.msra.gmra.mxu0 %v484_v36  ;;  %1556 = vmatprep.subr.bf16.mxu1 %v1798_v0 }
  0x6b   :  { %1534 = vmatprep.mubr.msk.bf16.mxu0 %vm1800_vm0, %v1798_v0  ;;  %1571 = vmatpush3.bf16.msra.mxu0 %v1676_v39 }
  0x6c   :  { %1572 = vmatprep.subr.bf16.mxu0 %v1798_v0 }
  0x6d   :  { %1557 = vmatpush3.bf16.msra.mxu1 %v1693_v58 }
  0x6e   :  { %1598 = vmatprep.subr.bf16.mxu1 %v1798_v0 }
  0x6f   :  { %1573 = vmatpush3.bf16.msra.mxu0 %v1677_v40  ;;  %v2006_v40 = vmul.u32.u64.low 3817748708, %v631_v35  ;;  %v2007_v41 = vmul.u32.u64.high 3817748708, %v631_v35, %v2006_v40 }
  0x70   :  { %1574 = vmatprep.subr.bf16.mxu0 %v1798_v0 }
  0x71   :  { %v682_v49 = vshrl.u32 %v2007_v41, 4 }
  0x72   :  { %1535 = vmatmul.mubr.bf16.gmra.mxu0 %v486_v38  ;;  %v649_v38 = vshrl.u32 %v1994_v21, 4 }
  0x73   :  { %1538 = vmatprep.mubr.msk.bf16.mxu0 %vm1800_vm0, %v1798_v0  ;;  %1575 = vmatpush3.bf16.msra.mxu0 %v1678_v42 }
  0x74   :  { %1576 = vmatprep.subr.bf16.mxu0 %v1798_v0  ;;  %v650_v44 = vmul.u32 18, %v649_v38 }
  0x77   :  { %1577 = vmatpush3.bf16.msra.mxu0 %v1680_v45  ;;  %v671_v45 = vshrl.u32 %v2003_v34, 4 }
  0x78   :  { %1578 = vmatprep.subr.bf16.mxu0 %v1798_v0 }
  0x7a   :  { %1539 = vmatmul.mubr.bf16.gmra.mxu0 %v485_v37  ;;  %v639_v37 = vmul.u32 18, %v638_v26 }
  0x7b   :  { %1586 = vmatprep.mubr.msk.bf16.mxu0 %vm1800_vm0, %v1798_v0  ;;  %1579 = vmatpush3.bf16.msra.mxu0 %v1682_v47  ;;  %v651_v47 = vsub.s32 %v628_v13, %v650_v44  ;;  %v804_v44 = vld [vmem:[#allocation3] sm:$0xf] }
  0x7c   :  { %1580 = vmatprep.subr.bf16.mxu0 %v1798_v0  ;;  %v640_v42 = vsub.s32 %v627_v6, %v639_v37 }
  0x7d   :  { %vm688_vm10 = vcmp.ne.s32.totalorder %v651_v47, 0  ;;  %vm693_vm13 = vcmp.lt.s32.totalorder %v651_v47, 0 }
  0x7e   :  { %vm687_vm6 = vcmp.ne.s32.totalorder %v640_v42, 0  ;;  %vm692_vm7 = vcmp.lt.s32.totalorder %v640_v42, 0  ;;  %v702_v30 = vadd.s32 18, %v640_v42  ;;  %vm2030_vm14 = vmand %vm693_vm13, %vm688_vm10 }
  0x7f   :  { %1581 = vmatpush3.bf16.msra.mxu0 %v1684_v48  ;;  %v672_v48 = vmul.u32 18, %v671_v45  ;;  %vm2012_vm9 = vmand %vm692_vm7, %vm687_vm6 }
  0x80   :  { %1582 = vmatprep.subr.bf16.mxu0 %v1798_v0  ;;  %v707_v58 = vsel %vm2012_vm9, %v702_v30, %v640_v42 }
  0x81   :  { %vm712_vm5 = vcmp.lt.s32.totalorder %v707_v58, 16 }
  0x83   :  { %1583 = vmatpush3.bf16.msra.mxu0 %v1686_v51 }
  0x84   :  { %1584 = vmatprep.subr.bf16.mxu0 %v1798_v0 }
  0x87   :  { %1585 = vmatpush3.bf16.msra.mxu0 %v1688_v55  ;;  %v662_v55 = vsub.s32 %v629_v18, %v661_v46 }
  0x89   :  { %vm689_vm15 = vcmp.ne.s32.totalorder %v662_v55, 0  ;;  %vm694_vm4 = vcmp.lt.s32.totalorder %v662_v55, 0  ;;  %v704_v12 = vadd.s32 18, %v662_v55 }
  0x8a   :  { %vm2040_vm9 = vmand %vm694_vm4, %vm689_vm15 }
 0x10a   :  { %v438_v59 = vpop.f32.mrf.mxu1  ;;  %v328_v63 = vpop.f32.mrf.mxu0 }
 0x10b   :  { %v439_v51 = vadd.f32 %v438_v59, %v328_v63 }
 0x10c   :  { %v1504_v60 = vpop.f32.mrf.mxu1  ;;  %v1476_v2 = vpop.f32.mrf.mxu0 }
 0x10d   :  { %v673_v60 = vsub.s32 %v630_v23, %v672_v48  ;;  %v703_v2 = vadd.s32 18, %v651_v47  ;;  %v1698_v48 = vld [vmem:[#allocation9 + $0xa8] sm:$0xff]  }
 0x10e   :  { %v1978_v61 = vpop.f32.mrf.mxu1  ;;  %v331_v4 = vpop.f32.mrf.mxu0 }
 0x10f   :  { %v442_v63 = vadd.f32 %v1978_v61, %v331_v4  ;;  %vm690_vm6 = vcmp.ne.s32.totalorder %v673_v60, 0  ;;  %vm695_vm7 = vcmp.lt.s32.totalorder %v673_v60, 0  ;;  %v708_v18 = vsel %vm2030_vm14, %v703_v2, %v651_v47 }
 0x110   :  { %v1505_v62 = vpop.f32.mrf.mxu1  ;;  %v1477_v7 = vpop.f32.mrf.mxu0  ;;  %v705_v21 = vadd.s32 18, %v673_v60  ;;  %vm2045_vm10 = vmand %vm695_vm7, %vm690_vm6  ;;  %vm713_vm13 = vcmp.lt.s32.totalorder %v708_v18, 16 }
 0x111   :  { %v683_v62 = vmul.u32 18, %v682_v49 }
 0x112   :  { %v1980_v3 = vpop.f32.mrf.mxu1  ;;  %v1984_v9 = vpop.f32.mrf.mxu0 }
 0x113   :  { %v684_v13 = vsub.s32 %v631_v35, %v683_v62  ;;  %v447_v61 = vadd.f32 %v1980_v3, %v1984_v9  ;;  %v709_v9 = vsel %vm2040_vm9, %v704_v12, %v662_v55  ;;  %v710_v35 = vsel %vm2045_vm10, %v705_v21, %v673_v60 }
 0x114   :  { %v1508_v5 = vpop.f32.mrf.mxu1  ;;  %v1480_v14 = vpop.f32.mrf.mxu0  ;;  %vm714_vm4 = vcmp.lt.s32.totalorder %v709_v9, 16  ;;  %vm2065_vm6 = vcmp.lt.s32.totalorder %v710_v35, 16 }
 0x115   :  { %vm691_vm14 = vcmp.ne.s32.totalorder %v684_v13, 0  ;;  %vm696_vm15 = vcmp.lt.s32.totalorder %v684_v13, 0 }
 0x116   :  { %v1982_v8 = vpop.f32.mrf.mxu1  ;;  %v1991_v17 = vpop.f32.mrf.mxu0 }
 0x117   :  { %v450_v29 = vadd.f32 %v1982_v8, %v1991_v17  ;;  %v1694_v8 = vld [vmem:[#allocation9 + $0xb8] sm:$0xff]  }
 0x118   :  { %v1509_v10 = vpop.f32.mrf.mxu1  ;;  %v1481_v22 = vpop.f32.mrf.mxu0 }
 0x11a   :  { %v1989_v15 = vpop.f32.mrf.mxu1  ;;  %v1996_v25 = vpop.f32.mrf.mxu0 }
 0x11b   :  { %v455_v17 = vadd.f32 %v1989_v15, %v1996_v25 }
 0x11c   :  { %v1512_v19 = vpop.f32.mrf.mxu1  ;;  %v1484_v32 = vpop.f32.mrf.mxu0 }
 0x11e   :  { %v457_v24 = vpop.f32.mrf.mxu1  ;;  %v347_v36 = vpop.f32.mrf.mxu0 }
 0x120   :  { %v1513_v31 = vpop.f32.mrf.mxu1  ;;  %v1485_v39 = vpop.f32.mrf.mxu0 }
 0x121   :  { %v706_v39 = vadd.s32 18, %v684_v13 }
 0x12a   :  { %v572_v54 = vpop.f32.mrf.mxu0 }
 0x12b   :  { %v594_v56 = vadd.f32 %v572_v54, %v439_v51 }
 0x12c   :  { %v1532_v59 = vpop.f32.mrf.mxu0 }
 0x12d   :  { %v605_v1 = vmul.f32 %v2019_v53, %v594_v56 }
 0x12e   :  { %v575_v5 = vpop.f32.mrf.mxu0 }
 0x12f   :  { %v616_v7 = vadd.f32 %v2024_v57, %v605_v1  ;;  %v595_v10 = vadd.f32 %v575_v5, %v442_v63 }
 0x130   :  { %v1533_v11 = vpop.f32.mrf.mxu0 }
 0x131   :  { %v621_v4 = vmax.f32 %v616_v7, 0.0  ;;  %v606_v14 = vmul.f32 %v2019_v53, %v595_v10 }
 0x132   :  { %v580_v20 = vpop.f32.mrf.mxu0 }
 0x133   :  { %v727_v22 = vsel %vm712_vm5, %v621_v4, 0.0  ;;  %v617_v23 = vadd.f32 %v2024_v57, %v606_v14  ;;  %v596_v24 = vadd.f32 %v580_v20, %v447_v61  ;;  %vm2058_vm5 = vmand %vm696_vm15, %vm691_vm14 }
 0x134   :  { %v1387_v3 = vpack.c.bf16 %v727_v22, %v727_v22  ;;  %v1536_v28 = vpop.f32.mrf.mxu0  ;;  %v711_v55 = vsel %vm2058_vm5, %v706_v39, %v684_v13 }
 0x135   :  { %v622_v31 = vmax.f32 %v617_v23, 0.0  ;;  %v607_v32 = vmul.f32 %v2019_v53, %v596_v24  ;;  %vm716_vm7 = vcmp.lt.s32.totalorder %v711_v55, 16 }
 0x136   :  { %v757_v33 = vshrl.u32 %v1387_v3, 16  ;;  %v583_v34 = vpop.f32.mrf.mxu0  ;;  %v760_v41 = vshll.u32 %v1387_v3, 16 }
 0x137   :  { %v728_v36 = vsel %vm713_vm13, %v622_v31, 0.0  ;;  %v618_v37 = vadd.f32 %v2024_v57, %v607_v32  ;;  %v597_v38 = vadd.f32 %v583_v34, %v450_v29  ;;  %v810_v34 = vld [vmem:[#allocation3 + $0x10] sm:$0x3] }
 0x138   :  { %v759_v40 = vrot.slane %v757_v33, 7  ;;  %v1388_v42 = vpack.c.bf16 %v728_v36, %v728_v36  ;;  %v1537_v43 = vpop.f32.mrf.mxu0 }
 0x139   :  { %v623_v45 = vmax.f32 %v618_v37, 0.0  ;;  %v608_v46 = vmul.f32 %v2019_v53, %v597_v38 }
 0x13a   :  { %v762_v47 = vor.u32 %v760_v41, %v759_v40  ;;  %v765_v30 = vshrl.u32 %v1388_v42, 16  ;;  %v588_v49 = vpop.f32.mrf.mxu0  ;;  %v768_v56 = vshll.u32 %v1388_v42, 16  ;;  %v763_v63 = vrot.slane %v759_v40, 4 }
 0x13b   :  { %v729_v51 = vsel %vm714_vm4, %v623_v45, 0.0  ;;  %v619_v52 = vadd.f32 %v2024_v57, %v608_v46  ;;  %v598_v54 = vadd.f32 %v588_v49, %v455_v17 }
 0x13c   :  { %v805_v15 = vsel %vm1877_vm12, %v762_v47, %v804_v44  ;;  %v767_v25 = vrot.slane %v765_v30, 7  ;;  %v1389_v58 = vpack.c.bf16 %v729_v51, %v729_v51  ;;  %v1540_v59 = vpop.f32.mrf.mxu0  ;;  %v1696_v44 = vld [vmem:[#allocation9 + $0xb0] sm:$0xff]   ;;  %v1699_v51 = vld [vmem:[#allocation9 + $0xa0] sm:$0xff]  }
 0x13d   :  { %806 = vst [vmem:[#allocation3] sm:$0xf] %v805_v15  ;;  %v624_v60 = vmax.f32 %v619_v52, 0.0  ;;  %v609_v62 = vmul.f32 %v2019_v53, %v598_v54  ;;  %v1700_v54 = vld [vmem:[#allocation9 + $0x98] sm:$0xff]   ;;  %v1701_v15 = vld [vmem:[#allocation9 + $0x90] sm:$0xff]  }
 0x13e   :  { %v770_v1 = vor.u32 %v768_v56, %v767_v25  ;;  %v774_v2 = vshrl.u32 %v1389_v58, 16  ;;  %v591_v5 = vpop.f32.mrf.mxu0  ;;  %v777_v11 = vshll.u32 %v1389_v58, 16  ;;  %v772_v53 = vrot.slane %v767_v25, 4  ;;  %v1702_v25 = vld [vmem:[#allocation9 + $0x88] sm:$0xff]   ;;  %v1703_v58 = vld [vmem:[#allocation9 + $0x80] sm:$0xff]  }
 0x13f   :  { %v730_v6 = vsel %vm2065_vm6, %v624_v60, 0.0  ;;  %v620_v7 = vadd.f32 %v2024_v57, %v609_v62 }
 0x140   :  { %v771_v27 = vsel %vm1870_vm8, %v763_v63, %v770_v1  ;;  %v776_v10 = vrot.slane %v774_v2, 7  ;;  %v1390_v12 = vpack.c.bf16 %v730_v6, %v730_v6  ;;  %v1541_v13 = vpop.f32.mrf.mxu0 }
 0x141   :  { %807 = vst [vmem:[#allocation3 + $0x4] sm:$0xf] %v771_v27  ;;  %v625_v61 = vmax.f32 %v620_v7, 0.0 }
 0x142   :  { %v779_v4 = vor.u32 %v777_v11, %v776_v10  ;;  %v783_v14 = vshrl.u32 %v1390_v12, 16  ;;  %v786_v21 = vshll.u32 %v1390_v12, 16  ;;  %v781_v22 = vrot.slane %v776_v10, 4 }
 0x143   :  { %v731_v18 = vsel %vm716_vm7, %v625_v61, 0.0 }
 0x144   :  { %v780_v19 = vsel %vm1870_vm8, %v772_v53, %v779_v4  ;;  %v785_v20 = vrot.slane %v783_v14, 7  ;;  %v1391_v57 = vpack.c.bf16 %v731_v18, %v731_v18  ;;  %v813_v28 = vld [vmem:[#allocation3] sm:$0xf] }
 0x145   :  { %808 = vst [vmem:[#allocation3 + $0x8] sm:$0xf] %v780_v19  ;;  %v1105_v56 = vld [vmem:[#allocation3] sm:$0xe] }
 0x146   :  { %v788_v23 = vor.u32 %v786_v21, %v785_v20  ;;  %v792_v24 = vshrl.u32 %v1391_v57, 16  ;;  %v795_v9 = vshll.u32 %v1391_v57, 16  ;;  %v790_v32 = vrot.slane %v785_v20, 4 }
 0x148   :  { %v789_v26 = vsel %vm1870_vm8, %v781_v22, %v788_v23  ;;  %v794_v3 = vrot.slane %v792_v24, 7  ;;  %v2084_v29 = vld [vmem:[#allocation3 + $0x4] sm:$0xf] }
 0x149   :  { %809 = vst [vmem:[#allocation3 + $0xc] sm:$0xf] %v789_v26  ;;  %v1352_v31 = vcombine.low %v813_v28, %v2084_v29  ;;  %v1372_v59 = vcombine.low %v1105_v56, %v2084_v29  ;;  %v1381_v29 = vld [vmem:[%s2135_s5] ss:$0 sm:$0xff]  ;;  %s1801_s5 = smov [#allocation10]  }
 0x14a   :  { %v797_v33 = vor.u32 %v795_v9, %v794_v3 }
 0x14b   :  { %1587 = vmatmul.mubr.bf16.vlgmr.msra.gmra.mxu0 %v1352_v31  ;;  %v868_v36 = vshll.u32 %v1352_v31, 16  ;;  %v866_v40 = vshrl.u32 %v1352_v31, 16  ;;  %v1126_v62 = vrot.slane %v1372_v59, 1 }
 0x14c   :  { %v798_v35 = vsel %vm1870_vm8, %v790_v32, %v797_v33  ;;  %1590 = vmatprep.mubr.msk.bf16.mxu0 %vm1800_vm0, %v1798_v0  ;;  %v1382_v33 = vld [vmem:[%s2136_s6] ss:$0 sm:$0xff]  ;;  %s1299_s6 = sshll.u32 %s1801_s5, 4  ;;  %s1300_s6 = int_to_ptr.vmem [resolvable:$true] %s1299_s6 }
 0x14d   :  { %v811_v37 = vsel %vm1903_vm1, %v798_v35, %v810_v34  ;;  %v870_v39 = vrot.slane %v868_v36, 1  ;;  %s1765_s23 = scalar_lea.vmem %s1300_s6, 512  ;;  %p1770_p2 = scmp.lt.s32.totalorder %s1300_s6, %s1300_s6 }
 0x14e   :  { %812 = vst [vmem:[#allocation3 + $0x10] sm:$0x3] %v811_v37  ;;  %v1265_v37 = vld [vmem:[#allocation4] sm:$0xff]  ;;  %p1766_p1 = scmp.ne.s32.totalorder %s1300_s6, %s1765_s23  ;;  %p1771_p3 = scmp.lt.s32.totalorder %s1765_s23, %s1765_s23 }
 0x14f   :  { %v871_v42 = vor.u32 %v870_v39, %v866_v40 }
 0x150   :  { %v1692_v38 = vld [vmem:[#allocation3 + $0x8] sm:$0xff]   ;;  %p1772_p4 = por %p1771_p3, %p1770_p2 }
 0x151   :  { %v873_v41 = vshll.u32 %v1692_v38, 16  ;;  %v877_v46 = vshrl.u32 %v1692_v38, 16  ;;  %v1127_v60 = vrot.slane %v1692_v38, 1 }
 0x152   :  { %p1773_p5 = pnand %p1772_p4, %p1766_p1 }
 0x153   :  { %1591 = vmatmul.mubr.bf16.gmra.mxu0 %v1692_v38  ;;  %v875_v43 = vrot.slane %v873_v41, 1  ;;  %v1128_v63 = vsel %vm481_vm3, %v1126_v62, %v1127_v60 }
 0x154   :  { %1594 = vmatprep.mubr.msk.bf16.mxu0 %vm1800_vm0, %v1798_v0 }
 0x155   :  { %v876_v16 = vsel %vm219_vm2, %v871_v42, %v875_v43  ;;  %v1697_v17 = vld [vmem:[#allocation3 + $0x10] ss:$0 sps:$4 sm:$0x33]   ;;  %v879_v30 = vor.u32 %v877_v46, %v875_v43 }
 0x156   :  { %1559 = vmatmul.mubr.bf16.vlgmr.msra.gmra.mxu1 %v876_v16  ;;  %v881_v50 = vshll.u32 %v1697_v17, 16  ;;  %v1695_v45 = vld [vmem:[#allocation3 + $0x10] ss:$0 sps:$4 sm:$0x11]   ;;  %v885_v52 = vshrl.u32 %v1697_v17, 16  ;;  %v1129_v1 = vrot.slane %v1697_v17, 1 }
 0x157   :  { %1599 = vmatpush3.bf16.msra.mxu1 %v1694_v8  ;;  %1562 = vmatprep.mubr.msk.bf16.mxu1 %vm1800_vm0, %v1798_v0  ;;  %v1266_v16 = vld [vmem:[#allocation4 + $0x8] sm:$0xff] }
 0x158   :  { %1600 = vmatprep.subr.bf16.mxu1 %v1798_v0  ;;  %v883_v47 = vrot.slane %v881_v50, 1  ;;  %v1130_v2 = vsel %vm481_vm3, %v1127_v60, %v1129_v1 }
 0x15a   :  { %v884_v49 = vsel %vm219_vm2, %v879_v30, %v883_v47  ;;  %v887_v55 = vor.u32 %v885_v52, %v883_v47  ;;  %v1274_v47 = vld [vmem:[#allocation4 + $0x18] sm:$0xff] }
 0x15b   :  { %1595 = vmatmul.mubr.bf16.gmra.mxu0 %v1695_v45  ;;  %1601 = vmatpush3.bf16.msra.mxu1 %v1696_v44  ;;  %v1273_v44 = vld [vmem:[#allocation4 + $0x10] sm:$0xff] }
 0x15c   :  { %1602 = vmatprep.subr.bf16.mxu1 %v1798_v0  ;;  %v1278_v52 = vrot.slane %v1273_v44, 6 }
 0x15e   :  { %1563 = vmatmul.mubr.bf16.gmra.mxu1 %v884_v49 }
 0x15f   :  { %1603 = vmatpush3.bf16.msra.mxu1 %v1698_v48  ;;  %1566 = vmatprep.mubr.msk.bf16.mxu1 %vm1800_vm0, %v1798_v0 }
 0x160   :  { %1604 = vmatprep.subr.bf16.mxu1 %v1798_v0 }
 0x163   :  { %1605 = vmatpush3.bf16.msra.mxu1 %v1699_v51 }
 0x164   :  { %1606 = vmatprep.subr.bf16.mxu1 %v1798_v0 }
 0x166   :  { %1567 = vmatmul.mubr.bf16.gmra.mxu1 %v887_v55  ;;  %v1279_v55 = vrot.slane %v1274_v47, 6 }
 0x167   :  { %1607 = vmatpush3.bf16.msra.mxu1 %v1700_v54  ;;  %1614 = vmatprep.mubr.msk.bf16.mxu1 %vm1800_vm0, %v1798_v0 }
 0x168   :  { %1608 = vmatprep.subr.bf16.mxu1 %v1798_v0 }
 0x16b   :  { %1609 = vmatpush3.bf16.msra.mxu1 %v1701_v15 }
 0x16c   :  { %1610 = vmatprep.subr.bf16.mxu1 %v1798_v0 }
 0x16f   :  { %1611 = vmatpush3.bf16.msra.mxu1 %v1702_v25 }
 0x170   :  { %1612 = vmatprep.subr.bf16.mxu1 %v1798_v0 }
 0x173   :  { %1613 = vmatpush3.bf16.msra.mxu1 %v1703_v58 }
 0x176   :  { %1615 = vmatmul.mubr.bf16.vlgmr.msra.gmra.mxu1 %v1128_v63  ;;  %v1280_v63 = vsel %vm162_vm11, %v1278_v52, %v1279_v55 }
 0x177   :  { %1618 = vmatprep.mubr.msk.bf16.mxu1 %vm1800_vm0, %v1798_v0 }
 0x17e   :  { %1619 = vmatmul.mubr.bf16.gmra.mxu1 %v1130_v2 }
 0x17f   :  { %1622 = vmatprep.mubr.msk.bf16.mxu1 %vm1800_vm0, %v1798_v0 }
 0x186   :  { %1623 = vmatmul.mubr.bf16.gmra.mxu1 %v1129_v1 }
 0x20b   :  { %v1083_v5 = vpop.f32.mrf.mxu0 }
 0x20d   :  { %v1588_v6 = vpop.f32.mrf.mxu0 }
 0x20f   :  { %v1086_v7 = vpop.f32.mrf.mxu0 }
 0x211   :  { %v1589_v27 = vpop.f32.mrf.mxu0 }
 0x213   :  { %v1091_v10 = vpop.f32.mrf.mxu0 }
 0x215   :  { %v1592_v11 = vpop.f32.mrf.mxu0 }
 0x216   :  { %v973_v13 = vpop.f32.mrf.mxu1 }
 0x217   :  { %v1094_v12 = vpop.f32.mrf.mxu0  ;;  %v1084_v28 = vadd.f32 %v1083_v5, %v973_v13 }
 0x218   :  { %v1560_v53 = vpop.f32.mrf.mxu1 }
 0x219   :  { %v1593_v61 = vpop.f32.mrf.mxu0 }
 0x21a   :  { %v976_v14 = vpop.f32.mrf.mxu1 }
 0x21b   :  { %v1099_v4 = vpop.f32.mrf.mxu0  ;;  %v1087_v35 = vadd.f32 %v1086_v7, %v976_v14 }
 0x21c   :  { %v1561_v19 = vpop.f32.mrf.mxu1 }
 0x21d   :  { %v1596_v18 = vpop.f32.mrf.mxu0 }
 0x21e   :  { %v981_v21 = vpop.f32.mrf.mxu1 }
 0x21f   :  { %v1102_v20 = vpop.f32.mrf.mxu0  ;;  %v1092_v42 = vadd.f32 %v1091_v10, %v981_v21 }
 0x220   :  { %v1564_v22 = vpop.f32.mrf.mxu1 }
 0x221   :  { %v1597_v57 = vpop.f32.mrf.mxu0 }
 0x222   :  { %v984_v0 = vpop.f32.mrf.mxu1 }
 0x223   :  { %v1095_v48 = vadd.f32 %v1094_v12, %v984_v0 }
 0x224   :  { %v1565_v23 = vpop.f32.mrf.mxu1 }
 0x226   :  { %v989_v24 = vpop.f32.mrf.mxu1 }
 0x227   :  { %v1100_v59 = vadd.f32 %v1099_v4, %v989_v24 }
 0x228   :  { %v1568_v26 = vpop.f32.mrf.mxu1 }
 0x22a   :  { %v992_v3 = vpop.f32.mrf.mxu1 }
 0x22c   :  { %v1569_v9 = vpop.f32.mrf.mxu1 }
 0x236   :  { %v1216_v31 = vpop.f32.mrf.mxu1 }
 0x237   :  { %v1238_v32 = vadd.f32 %v1216_v31, %v1084_v28 }
 0x238   :  { %v1616_v34 = vpop.f32.mrf.mxu1 }
 0x239   :  { %v1249_v36 = vmul.f32 %v1381_v29, %v1238_v32 }
 0x23a   :  { %v1219_v38 = vpop.f32.mrf.mxu1 }
 0x23b   :  { %v1260_v39 = vadd.f32 %v1382_v33, %v1249_v36  ;;  %v1239_v40 = vadd.f32 %v1219_v38, %v1087_v35 }
 0x23c   :  { %v1617_v41 = vpop.f32.mrf.mxu1 }
 0x23d   :  { %v1267_v43 = vadd.f32 %v1265_v37, %v1260_v39  ;;  %v1250_v8 = vmul.f32 %v1381_v29, %v1239_v40 }
 0x23e   :  { %v1224_v17 = vpop.f32.mrf.mxu1 }
 0x23f   :  { %v1269_v50 = vmax.f32 %v1267_v43, 0.0  ;;  %v1261_v45 = vadd.f32 %v1382_v33, %v1250_v8  ;;  %v1240_v46 = vadd.f32 %v1224_v17, %v1092_v42 }
 0x240   :  { %v1620_v30 = vpop.f32.mrf.mxu1 }
 0x241   :  { %1271 = vst [vmem:[#allocation10] sm:$0xff] %v1269_v50  ;;  %v1268_v49 = vadd.f32 %v1266_v16, %v1261_v45  ;;  %v1251_v51 = vmul.f32 %v1381_v29, %v1240_v46 }
 0x242   :  { %v1227_v54 = vpop.f32.mrf.mxu1 }
 0x243   :  { %v1270_v15 = vmax.f32 %v1268_v49, 0.0  ;;  %v1262_v25 = vadd.f32 %v1382_v33, %v1251_v51  ;;  %v1241_v56 = vadd.f32 %v1227_v54, %v1095_v48 }
 0x244   :  { %v1621_v58 = vpop.f32.mrf.mxu1 }
 0x245   :  { %1272 = vst [vmem:[#allocation10 + $0x8] sm:$0xff] %v1270_v15  ;;  %v1284_v60 = vadd.f32 %v1278_v52, %v1262_v25  ;;  %v1252_v62 = vmul.f32 %v1381_v29, %v1241_v56 }
 0x246   :  { %v1232_v1 = vpop.f32.mrf.mxu1 }
 0x247   :  { %v1287_v2 = vmax.f32 %v1284_v60, 0.0  ;;  %v1263_v5 = vadd.f32 %v1382_v33, %v1252_v62  ;;  %v1242_v6 = vadd.f32 %v1232_v1, %v1100_v59 }
 0x248   :  { %v1624_v7 = vpop.f32.mrf.mxu1 }
 0x249   :  { %1291 = vst [vmem:[#allocation10 + $0xe] sm:$0xfc] %v1287_v2  ;;  %v1285_v27 = vadd.f32 %v1280_v63, %v1263_v5  ;;  %v1253_v10 = vmul.f32 %v1381_v29, %v1242_v6 }
 0x24a   :  { %v1235_v11 = vpop.f32.mrf.mxu1 }
 0x24b   :  { %v1288_v12 = vmax.f32 %v1285_v27, 0.0  ;;  %v1264_v13 = vadd.f32 %v1382_v33, %v1253_v10 }
 0x24c   :  { %v1625_v61 = vpop.f32.mrf.mxu1 }
 0x24d   :  { %1292 = vst [vmem:[#allocation10 + $0x16] sm:$0xff] %v1288_v12  ;;  %v1286_v53 = vadd.f32 %v1279_v55, %v1264_v13 }
 0x24f   :  { %v1289_v4 = vmax.f32 %v1286_v53, 0.0 }
 0x251   :  { %1293 = vst [vmem:[#allocation10 + $0x1e] sm:$0x3] %v1289_v4 }
 0x252   :  { %1776 = shalt.err (!%p1773_p5)
}
 0x253   :  { %1305 = dma.vmem_to_hbm [thread:$0]  %s1300_s6, 512, %s2137_s7, [#allocation6], %s1795_s11, %s1795_s11, %s1796_s12  }
 0x254   :  { %1789 = dma.done.wait [#allocation6], 512  }
 0x255   :  { %1790 = vsyncadd [#allocation6], 4294966784 }
 0x256   :  { %1309 = vsyncpa [#allocation5], 1 }
 0x257   :  { %1310 = vsyncpa [#allocation8], 1 }
 0x258   :  { %1311 = vsyncpa [#allocation6], 1 }

</bundles_post_ra>
